<compile_context>
chip_gen: v6e
topology: v6e:2x2x1
jax: 0.10.0
libtpu: 0.0.40
codegen_flags: <defaults>
</compile_context>

<pallas_src>
import functools

import jax
import jax.numpy as jnp
from jax.experimental import pallas as pl
from jax.experimental.pallas import tpu as pltpu


def _mlp_policy_kernel(n_linear, compute_dtype, precision, *refs):
    """One grid step: full MLP forward on a (dim, TB) batch-on-lanes tile.

    refs layout:
      obs_ref (ob_dim, TB), then (W_0, b_0) ... (W_{n_linear-1}, b_{n_linear-1})
      with W_l: (out_l, in_l), b_l: (out_l, 1), then out_ref (ac_dim, TB).
    """
    obs_ref = refs[0]
    out_ref = refs[-1]
    w_refs = refs[1:-1]

    x = obs_ref[...]  # (ob_dim, TB), compute_dtype
    for layer in range(n_linear):
        w = w_refs[2 * layer][...]        # (out, in), compute_dtype
        b = w_refs[2 * layer + 1][...]    # (out, 1),  float32
        h = jnp.dot(w, x, preferred_element_type=jnp.float32,
                    precision=precision) + b                  # (out, TB), f32 accum
        if layer < n_linear - 1:          # hidden layers: Tanh (f32 on VPU/EUP)
            x = jnp.tanh(h).astype(compute_dtype)
        else:                             # output layer: identity
            x = h
    out_ref[...] = x.astype(out_ref.dtype)


def _pick_batch_tile(ob_dim, ac_dim, layer_size, compute_dtype,
                     vmem_budget_bytes=16 * 1024 * 1024):
    """Batch-tile (lane) width sized against a budget valid on v5e/v6e/v7x.

    Budget is conservative w.r.t. v7x's 64 MiB physical VMEM and the 32 MiB
    scoped limit we request below; obs/out tiles are double-buffered and hidden
    activations live in f32 temporaries.
    """
    c = jnp.dtype(compute_dtype).itemsize
    per_col = 2 * ob_dim * c + 2 * ac_dim * 4 + 3 * layer_size * 4
    tb = vmem_budget_bytes // max(per_col, 1)
    tb = max(256, min(4096, (tb // 128) * 128))   # >=256 to amortize ~0.35us/step
    return int(tb)


def make_mlp_policy_forward(ac_dim, ob_dim, discrete, n_layers, layer_size,
                            compute_dtype=jnp.bfloat16, batch_tile=None):
    """Returns forward(obs, params) backed by a single batch-tiled pallas_call."""
    n_linear = n_layers + 1
    precision = (jax.lax.Precision.HIGHEST if compute_dtype == jnp.float32
                 else jax.lax.Precision.DEFAULT)
    kernel = functools.partial(_mlp_policy_kernel, n_linear, compute_dtype, precision)
    tb_max = batch_tile or _pick_batch_tile(ob_dim, ac_dim, layer_size, compute_dtype)

    compiler_params = pltpu.CompilerParams(
        dimension_semantics=("parallel",),          # 2x on v7x's two TCs; free elsewhere
        vmem_limit_bytes=32 * 1024 * 1024,          # valid on v5e/v6e (128 MiB) and v7x (64 MiB)
    )

    def forward(obs, params):
        B = obs.shape[0]
        # Lane-dense layout: batch on lanes. Wrapper-side transpose is layout plumbing.
        x_t = obs.T.astype(compute_dtype)           # (ob_dim, B)

        flat_inputs = [x_t]
        in_specs = []
        for (w, b) in params["layers"]:
            flat_inputs += [w.astype(compute_dtype), b]   # bf16 weights halve HBM traffic
            in_specs += [
                pl.BlockSpec(w.shape, lambda i: (0, 0)),  # VMEM-resident across grid
                pl.BlockSpec(b.shape, lambda i: (0, 0)),
            ]

        TB = B if B <= tb_max else tb_max           # block==full array is always legal;
        grid = (pl.cdiv(B, TB),)                    # partial edge blocks are masked by Pallas
        obs_spec = pl.BlockSpec((ob_dim, TB), lambda i: (0, i))
        out_spec = pl.BlockSpec((ac_dim, TB), lambda i: (0, i))

        out_t = pl.pallas_call(
            kernel,
            out_shape=jax.ShapeDtypeStruct((ac_dim, B), jnp.float32),
            grid=grid,
            in_specs=[obs_spec] + in_specs,
            out_specs=out_spec,
            compiler_params=compiler_params,
        )(*flat_inputs)

        out = out_t.T                               # (B, ac_dim): logits or mean
        if discrete:
            return out                              # Categorical(logits=out)
        std = jnp.exp(params["logstd"])             # (ac_dim,), computed outside the kernel
        return out, jnp.broadcast_to(std, out.shape)  # Normal(mean=out, std)

    return forward


def init_mlp_policy_params(key, ac_dim, ob_dim, discrete, n_layers, layer_size):
    """Deterministic init mimicking torch.nn.Linear default U(-1/sqrt(fan_in), +).

    Weights kept in PyTorch's native (out_features, in_features) layout; biases as
    (out, 1) columns so the kernel's per-layer W @ X + b broadcasts over lanes.
    """
    dims = [ob_dim] + [layer_size] * n_layers + [ac_dim]
    layers = []
    for fan_in, fan_out in zip(dims[:-1], dims[1:]):
        key, kw, kb = jax.random.split(key, 3)
        bound = 1.0 / jnp.sqrt(fan_in)
        w = jax.random.uniform(kw, (fan_out, fan_in), jnp.float32, -bound, bound)
        b = jax.random.uniform(kb, (fan_out, 1), jnp.float32, -bound, bound)
        layers.append((w, b))
    params = {"layers": layers}
    if not discrete:
        params["logstd"] = jnp.zeros((ac_dim,), jnp.float32)  # nn.Parameter(zeros(ac_dim))
    return params


def _reference_forward(obs, params, discrete, compute_dtype, precision):
    """Pure-JAX reference doing the same dtype casts / precision as the kernel."""
    x = obs
    n_linear = len(params["layers"])
    for i, (w, b) in enumerate(params["layers"]):
        x = jnp.dot(x.astype(compute_dtype), w.astype(compute_dtype).T,
                    preferred_element_type=jnp.float32, precision=precision) + b.T
        if i < n_linear - 1:
            x = jnp.tanh(x)
    if discrete:
        return x
    return x, jnp.broadcast_to(jnp.exp(params["logstd"]), x.shape)


if __name__ == "__main__":
    # Small shapes consistent with the module's forward: obs (B, ob_dim)
    B, ob_dim, ac_dim = 8, 16, 8
    n_layers, layer_size = 2, 32

    key = jax.random.PRNGKey(0)
    k_obs, k_params, k_obs2 = jax.random.split(key, 3)
    obs = jax.random.normal(k_obs, (B, ob_dim), jnp.float32)

    # ---- continuous policy (Normal(mean, exp(logstd))), bf16 matmul path ----
    params_c = init_mlp_policy_params(k_params, ac_dim, ob_dim, False, n_layers, layer_size)
    fwd_c = make_mlp_policy_forward(ac_dim, ob_dim, False, n_layers, layer_size,
                                    compute_dtype=jnp.bfloat16)
    mean, std = fwd_c(obs, params_c)
    mean, std = jax.block_until_ready(mean), jax.block_until_ready(std)
    ref_mean, ref_std = _reference_forward(obs, params_c, False, jnp.bfloat16,
                                           jax.lax.Precision.DEFAULT)
    assert jnp.allclose(mean, ref_mean, atol=1e-4, rtol=1e-4)
    assert jnp.allclose(std, ref_std, atol=1e-5, rtol=1e-5)

    # ---- discrete policy (Categorical(logits)), f32 HIGHEST-precision path ----
    params_d = init_mlp_policy_params(k_params, ac_dim, ob_dim, True, n_layers, layer_size)
    fwd_d = make_mlp_policy_forward(ac_dim, ob_dim, True, n_layers, layer_size,
                                    compute_dtype=jnp.float32)
    logits = jax.block_until_ready(fwd_d(obs, params_d))
    ref_logits = _reference_forward(obs, params_d, True, jnp.float32,
                                    jax.lax.Precision.HIGHEST)
    assert jnp.allclose(logits, ref_logits, atol=1e-5, rtol=1e-5)

    # ---- multi-tile grid path (B > batch tile, partial edge block masked) ----
    B2 = 600
    obs2 = jax.random.normal(k_obs2, (B2, ob_dim), jnp.float32)
    fwd_g = make_mlp_policy_forward(ac_dim, ob_dim, True, n_layers, layer_size,
                                    compute_dtype=jnp.float32, batch_tile=256)
    logits2 = jax.block_until_ready(fwd_g(obs2, params_d))
    ref_logits2 = _reference_forward(obs2, params_d, True, jnp.float32,
                                     jax.lax.Precision.HIGHEST)
    assert jnp.allclose(logits2, ref_logits2, atol=1e-5, rtol=1e-5)

    print("KERNEL_OK")
</pallas_src>

<mosaic_0001>
module attributes {stable_mosaic.version = 11 : i64} {
  func.func @_mlp_policy_kernel(%arg0: i32, %arg1: memref<16x8xbf16, #tpu.memory_space<vmem>>, %arg2: memref<32x16xbf16, #tpu.memory_space<vmem>>, %arg3: memref<32x1xf32, #tpu.memory_space<vmem>>, %arg4: memref<32x32xbf16, #tpu.memory_space<vmem>>, %arg5: memref<32x1xf32, #tpu.memory_space<vmem>>, %arg6: memref<8x32xbf16, #tpu.memory_space<vmem>>, %arg7: memref<8x1xf32, #tpu.memory_space<vmem>>, %arg8: memref<8x8xf32, #tpu.memory_space<vmem>>) attributes {dimension_semantics = [#tpu.dimension_semantics<parallel>], iteration_bounds = array<i64: 1>, scalar_prefetch = 0 : i64, scratch_operands = 0 : i64, tpu.core_type = #tpu.core_type<tc>, window_params = [{transform_indices = @transform_0, window_bounds = array<i64: 16, 8>}, {pipeline_mode = #tpu.pipeline_mode<synchronous>, transform_indices = @transform_1, window_bounds = array<i64: 32, 16>}, {pipeline_mode = #tpu.pipeline_mode<synchronous>, transform_indices = @transform_2, window_bounds = array<i64: 32, 1>}, {pipeline_mode = #tpu.pipeline_mode<synchronous>, transform_indices = @transform_3, window_bounds = array<i64: 32, 32>}, {pipeline_mode = #tpu.pipeline_mode<synchronous>, transform_indices = @transform_4, window_bounds = array<i64: 32, 1>}, {pipeline_mode = #tpu.pipeline_mode<synchronous>, transform_indices = @transform_5, window_bounds = array<i64: 8, 32>}, {pipeline_mode = #tpu.pipeline_mode<synchronous>, transform_indices = @transform_6, window_bounds = array<i64: 8, 1>}, {transform_indices = @transform_7, window_bounds = array<i64: 8, 8>}]} {
    %c0 = arith.constant 0 : index
    %c0_0 = arith.constant 0 : index
    %0 = vector.load %arg1[%c0, %c0_0] : memref<16x8xbf16, #tpu.memory_space<vmem>>, vector<16x8xbf16>
    %c0_1 = arith.constant 0 : index
    %c0_2 = arith.constant 0 : index
    %1 = vector.load %arg2[%c0_1, %c0_2] : memref<32x16xbf16, #tpu.memory_space<vmem>>, vector<32x16xbf16>
    %c0_3 = arith.constant 0 : index
    %c0_4 = arith.constant 0 : index
    %2 = vector.load %arg3[%c0_3, %c0_4] : memref<32x1xf32, #tpu.memory_space<vmem>>, vector<32x1xf32>
    %cst = arith.constant dense<0.000000e+00> : vector<32x8xf32>
    %3 = tpu.matmul %1, %0, %cst {dimension_numbers = #tpu.dot_dimension_numbers<[1], [0], [0], [1], [0, 0, 1, 1], [], []>} : vector<32x16xbf16>, vector<16x8xbf16>, vector<32x8xf32> -> vector<32x8xf32>
    %4 = vector.broadcast %2 : vector<32x1xf32> to vector<32x8xf32>
    %5 = arith.addf %3, %4 : vector<32x8xf32>
    %6 = math.tanh %5 : vector<32x8xf32>
    %7 = arith.truncf %6 : vector<32x8xf32> to vector<32x8xbf16>
    %c0_5 = arith.constant 0 : index
    %c0_6 = arith.constant 0 : index
    %8 = vector.load %arg4[%c0_5, %c0_6] : memref<32x32xbf16, #tpu.memory_space<vmem>>, vector<32x32xbf16>
    %c0_7 = arith.constant 0 : index
    %c0_8 = arith.constant 0 : index
    %9 = vector.load %arg5[%c0_7, %c0_8] : memref<32x1xf32, #tpu.memory_space<vmem>>, vector<32x1xf32>
    %cst_9 = arith.constant dense<0.000000e+00> : vector<32x8xf32>
    %10 = tpu.matmul %8, %7, %cst_9 {dimension_numbers = #tpu.dot_dimension_numbers<[1], [0], [0], [1], [0, 0, 1, 1], [], []>} : vector<32x32xbf16>, vector<32x8xbf16>, vector<32x8xf32> -> vector<32x8xf32>
    %11 = vector.broadcast %9 : vector<32x1xf32> to vector<32x8xf32>
    %12 = arith.addf %10, %11 : vector<32x8xf32>
    %13 = math.tanh %12 : vector<32x8xf32>
    %14 = arith.truncf %13 : vector<32x8xf32> to vector<32x8xbf16>
    %c0_10 = arith.constant 0 : index
    %c0_11 = arith.constant 0 : index
    %15 = vector.load %arg6[%c0_10, %c0_11] : memref<8x32xbf16, #tpu.memory_space<vmem>>, vector<8x32xbf16>
    %c0_12 = arith.constant 0 : index
    %c0_13 = arith.constant 0 : index
    %16 = vector.load %arg7[%c0_12, %c0_13] : memref<8x1xf32, #tpu.memory_space<vmem>>, vector<8x1xf32>
    %cst_14 = arith.constant dense<0.000000e+00> : vector<8x8xf32>
    %17 = tpu.matmul %15, %14, %cst_14 {dimension_numbers = #tpu.dot_dimension_numbers<[1], [0], [0], [1], [0, 0, 1, 1], [], []>} : vector<8x32xbf16>, vector<32x8xbf16>, vector<8x8xf32> -> vector<8x8xf32>
    %18 = vector.broadcast %16 : vector<8x1xf32> to vector<8x8xf32>
    %19 = arith.addf %17, %18 : vector<8x8xf32>
    %c0_15 = arith.constant 0 : index
    %c0_16 = arith.constant 0 : index
    %20 = vector.load %arg8[%c0_15, %c0_16] : memref<8x8xf32, #tpu.memory_space<vmem>>, vector<8x8xf32>
    tpu.vector_store %arg8[%c0_15, %c0_16], %19 {strides = array<i32>} : memref<8x8xf32, #tpu.memory_space<vmem>>, vector<8x8xf32>,
    return
  }
  func.func @transform_0(%arg0: i32) -> (i32, i32) {
    %c0_i32 = arith.constant 0 : i32
    %c0_i32_0 = arith.constant 0 : i32
    return %c0_i32, %arg0 : i32, i32
  }
  func.func @transform_1(%arg0: i32) -> (i32, i32) {
    %c0_i32 = arith.constant 0 : i32
    %c0_i32_0 = arith.constant 0 : i32
    %c0_i32_1 = arith.constant 0 : i32
    return %c0_i32, %c0_i32_0 : i32, i32
  }
  func.func @transform_2(%arg0: i32) -> (i32, i32) {
    %c0_i32 = arith.constant 0 : i32
    %c0_i32_0 = arith.constant 0 : i32
    %c0_i32_1 = arith.constant 0 : i32
    return %c0_i32, %c0_i32_0 : i32, i32
  }
  func.func @transform_3(%arg0: i32) -> (i32, i32) {
    %c0_i32 = arith.constant 0 : i32
    %c0_i32_0 = arith.constant 0 : i32
    %c0_i32_1 = arith.constant 0 : i32
    return %c0_i32, %c0_i32_0 : i32, i32
  }
  func.func @transform_4(%arg0: i32) -> (i32, i32) {
    %c0_i32 = arith.constant 0 : i32
    %c0_i32_0 = arith.constant 0 : i32
    %c0_i32_1 = arith.constant 0 : i32
    return %c0_i32, %c0_i32_0 : i32, i32
  }
  func.func @transform_5(%arg0: i32) -> (i32, i32) {
    %c0_i32 = arith.constant 0 : i32
    %c0_i32_0 = arith.constant 0 : i32
    %c0_i32_1 = arith.constant 0 : i32
    return %c0_i32, %c0_i32_0 : i32, i32
  }
  func.func @transform_6(%arg0: i32) -> (i32, i32) {
    %c0_i32 = arith.constant 0 : i32
    %c0_i32_0 = arith.constant 0 : i32
    %c0_i32_1 = arith.constant 0 : i32
    return %c0_i32, %c0_i32_0 : i32, i32
  }
  func.func @transform_7(%arg0: i32) -> (i32, i32) {
    %c0_i32 = arith.constant 0 : i32
    %c0_i32_0 = arith.constant 0 : i32
    return %c0_i32, %arg0 : i32, i32
  }
}

</mosaic_0001>

<bundles_post_ra>
// kernel: tpu_custom_call.1
= control target key start
LH: loop header
LB: loop body
LE: loop exit
PB: predicated region body
PF: predicated region fallthrough
CT: control target
= control target key end

     0   :  { %vm74_vm0 = vcmask 130048   ;;  %v393_v3 = vmov 0   ;;  %s488_s0 = inlined_call_operand.vmem [shape: bf16[16,8], index: 0, kind: input, shape index: {}]   ;;  %s489_s1 = inlined_call_operand.vmem [shape: bf16[32,16], index: 1, kind: input, shape index: {}]   ;;  %s490_s2 = inlined_call_operand.vmem [shape: f32[32,1], index: 2, kind: input, shape index: {}]   ;;  %s491_s3 = inlined_call_operand.vmem [shape: bf16[32,32], index: 3, kind: input, shape index: {}]   ;;  %s492_s4 = inlined_call_operand.vmem [shape: f32[32,1], index: 4, kind: input, shape index: {}]   ;;  %s493_s5 = inlined_call_operand.vmem [shape: bf16[8,32], index: 5, kind: input, shape index: {}]   ;;  %s494_s6 = inlined_call_operand.vmem [shape: f32[8,1], index: 6, kind: input, shape index: {}]   ;;  %s495_s7 = inlined_call_operand.hbm [shape: f32[8,8], index: 7, kind: output, shape index: {}]  }
   0x1   :  { %v350_v0 = vld [vmem:[%s488_s0] sm:$0xff]   ;;  %v352_v2 = vld [vmem:[%s489_s1 + $0x8] sm:$0xff]   ;;  %348 = vset.pattern.permute.xlu0 %v393_v3  ;;  %v36_v4 = vld [vmem:[%s490_s2 + $0x10] sm:$0xff]  ;;  %349 = vset.pattern.permute.xlu1 %v393_v3 }
   0x2   :  { %v351_v1 = vld [vmem:[%s489_s1] sm:$0xff]   ;;  %322 = vmatprep.subr.bf16.mxu0 %v350_v0  ;;  %50 = vperm.xlu0 %348, %v36_v4   ;;  %v37_v6 = vld [vmem:[%s490_s2 + $0x18] sm:$0xff]  ;;  %v35_v7 = vld [vmem:[%s490_s2 + $0x8] sm:$0xff] }
   0x3   :  { %323 = vmatpush3.bf16.msra.mxu0 %v350_v0  ;;  %324 = vmatprep.mubr.msk.bf16.mxu0 %vm74_vm0, %v351_v1  ;;  %v34_v5 = vld [vmem:[%s490_s2] sm:$0xff] }
   0x4   :  { %40 = vperm.xlu1 %349, %v34_v5  }
   0x6   :  { %325 = vmatmul.mubr.msk.bf16.vlgmr.msra.gmra.mxu0 %vm74_vm0, %v352_v2 }
   0x7   :  { %12 = vsyncpa [#allocation3], 0  ;;  %55 = vperm.xlu0 %348, %v37_v6   ;;  %v142_v8 = vld [vmem:[%s492_s4 + $0x10] sm:$0xff]  ;;  %v143_v9 = vld [vmem:[%s492_s4 + $0x18] sm:$0xff]  ;;  %vm174_vm1 = vcmask 261120   ;;  %v394_v33 = vmov 0.0  }
   0x8   :  { %45 = vperm.xlu1 %349, %v35_v7   ;;  %v140_v10 = vld [vmem:[%s492_s4] sm:$0xff]  ;;  %v141_v11 = vld [vmem:[%s492_s4 + $0x8] sm:$0xff]  ;;  %336 = vmatprep.subr.bf16.mxu0 %v394_v33  ;;  %vm395_vm2 = vmmov 0   ;;  %s396_s25 = smov [#allocation2]   ;;  %vm286_vm3 = vcmask 64512  }
   0x9   :  { %v237_v12 = vld [vmem:[%s494_s6] sm:$0xff]  ;;  %v354_v32 = vld [vmem:[%s491_s3 + $0x8] sm:$0xff]   ;;  %340 = vmatprep.mubr.msk.bf16.mxu0 %vm395_vm2, %v394_v33  ;;  %s294_s26 = sshll.u32 %s396_s25, 4  ;;  %s295_s26 = int_to_ptr.vmem [resolvable:$true] %s294_s26 }
   0xa   :  { %v353_v13 = vld [vmem:[%s491_s3] sm:$0xff]   ;;  %s371_s27 = scalar_lea.vmem %s295_s26, 128  ;;  %p376_p1 = scmp.lt.s32.totalorder %s295_s26, %s295_s26 }
   0xb   :  { %156 = vperm.xlu0 %348, %v142_v8   ;;  %332 = vmatprep.mubr.msk.bf16.mxu1 %vm174_vm1, %v353_v13  ;;  %v236_v52 = vld [vmem:[%s493_s5] sm:$0xf]  ;;  %p372_p0 = scmp.ne.s32.totalorder %s295_s26, %s371_s27  ;;  %p377_p2 = scmp.lt.s32.totalorder %s371_s27, %s371_s27 }
   0xc   :  { %161 = vperm.xlu1 %349, %v143_v9  }
   0xd   :  { %p378_p3 = por %p377_p2, %p376_p1 }
   0xf   :  { %146 = vperm.xlu0 %348, %v140_v10   ;;  %p379_p4 = pnand %p378_p3, %p372_p0 }
  0x10   :  { %151 = vperm.xlu1 %349, %v141_v11  }
  0x13   :  { %240 = vperm.xlu0 %348, %v237_v12  }
  0x7d   :  { %v51_v14 = vpop.permute.xlu0 %50 }
  0x7f   :  { %v41_v15 = vpop.permute.xlu1 %40 }
  0x82   :  { %v56_v19 = vpop.permute.xlu0 %55 }
  0x83   :  { %v46_v23 = vpop.permute.xlu1 %45 }
  0x86   :  { %v157_v34 = vpop.permute.xlu0 %156 }
  0x87   :  { %v162_v35 = vpop.permute.xlu1 %161 }
  0x8a   :  { %v147_v40 = vpop.permute.xlu0 %146 }
  0x8b   :  { %v152_v42 = vpop.permute.xlu1 %151 }
  0x8e   :  { %v241_v53 = vpop.permute.xlu0 %240 }
  0xc6   :  { %v326_v16 = vpop.f32.mrf.mxu0 }
  0xc7   :  { %v124_v17 = vadd.f32 %v326_v16, %v51_v14 }
  0xc8   :  { %v115_v18 = vpop.f32.mrf.mxu0 }
  0xc9   :  { %v116_v20 = vadd.f32 %v115_v18, %v41_v15  ;;  %355 = vtanh.f32 %v124_v17 }
  0xca   :  { %v327_v21 = vpop.f32.mrf.mxu0 }
  0xcb   :  { %v127_v22 = vadd.f32 %v327_v21, %v56_v19 }
  0xcc   :  { %v118_v24 = vpop.f32.mrf.mxu0 }
  0xcd   :  { %357 = vtanh.f32 %v127_v22  ;;  %v119_v25 = vadd.f32 %v118_v24, %v46_v23 }
  0xce   :  { %359 = vtanh.f32 %v116_v20 }
  0xcf   :  { %361 = vtanh.f32 %v119_v25 }
  0xd6   :  { %v356_v26 = vpop.eup %355 }
  0xda   :  { %v358_v27 = vpop.eup %357 }
  0xdb   :  { %v360_v28 = vpop.eup %359  ;;  %v135_v29 = vpack.c.bf16 %v358_v27, %v356_v26 }
  0xdc   :  { %v362_v30 = vpop.eup %361 }
  0xdd   :  { %328 = vmatprep.subr.bf16.mxu1 %v135_v29  ;;  %v134_v31 = vpack.c.bf16 %v362_v30, %v360_v28 }
  0xde   :  { %329 = vmatpush3.bf16.msra.mxu1 %v135_v29 }
  0xdf   :  { %330 = vmatprep.subr.bf16.mxu1 %v134_v31 }
  0xe2   :  { %331 = vmatpush3.bf16.msra.mxu1 %v134_v31 }
  0xe5   :  { %333 = vmatmul.mubr.msk.bf16.vlgmr.msra.gmra.mxu1 %vm174_vm1, %v354_v32 }
 0x1a5   :  { %v334_v36 = vpop.f32.mrf.mxu1 }
 0x1a6   :  { %v224_v37 = vadd.f32 %v334_v36, %v157_v34 }
 0x1a7   :  { %v215_v38 = vpop.f32.mrf.mxu1 }
 0x1a8   :  { %363 = vtanh.f32 %v224_v37  ;;  %v216_v44 = vadd.f32 %v215_v38, %v147_v40 }
 0x1a9   :  { %v335_v39 = vpop.f32.mrf.mxu1 }
 0x1aa   :  { %v227_v41 = vadd.f32 %v335_v39, %v162_v35 }
 0x1ab   :  { %v218_v43 = vpop.f32.mrf.mxu1 }
 0x1ac   :  { %365 = vtanh.f32 %v227_v41  ;;  %v219_v45 = vadd.f32 %v218_v43, %v152_v42 }
 0x1ae   :  { %367 = vtanh.f32 %v219_v45 }
 0x1af   :  { %369 = vtanh.f32 %v216_v44 }
 0x1b5   :  { %v364_v46 = vpop.eup %363 }
 0x1b9   :  { %v366_v47 = vpop.eup %365 }
 0x1ba   :  { %v235_v48 = vpack.c.bf16 %v366_v47, %v364_v46 }
 0x1bb   :  { %v368_v49 = vpop.eup %367 }
 0x1bc   :  { %337 = vmatpush3.bf16.msra.mxu0 %v235_v48  ;;  %v370_v50 = vpop.eup %369 }
 0x1bd   :  { %338 = vmatprep.subr.bf16.mxu0 %v394_v33  ;;  %v234_v51 = vpack.c.bf16 %v368_v49, %v370_v50 }
 0x1c0   :  { %339 = vmatpush3.bf16.msra.mxu0 %v234_v51 }
 0x1c3   :  { %341 = vmatmul.mubr.msk.bf16.vlgmr.msra.gmra.mxu0 %vm174_vm1, %v236_v52 }
 0x283   :  { %v280_v54 = vpop.f32.mrf.mxu0 }
 0x284   :  { %v281_v55 = vadd.f32 %v280_v54, %v241_v53 }
 0x285   :  { %v342_v56 = vpop.f32.mrf.mxu0 }
 0x286   :  { %287 = vst.msk [vmem:[#allocation2] sm:$0xff] %vm286_vm3, %v281_v55 }
 0x287   :  { %v283_v57 = vpop.f32.mrf.mxu0 }
 0x288   :  { %382 = shalt.err (!%p379_p4)
}
 0x289   :  { %297 = dma.vmem_to_hbm [thread:$0]  %s295_s26, 128, %s495_s7, [#allocation3]   ;;  %v343_v58 = vpop.f32.mrf.mxu0 }
 0x28a   :  { %391 = dma.done.wait [#allocation3], 128  }
 0x28b   :  { %392 = vsyncadd [#allocation3], 4294967168 }
 0x28c   :  { %301 = vsyncpa [#allocation3], 1 }

</bundles_post_ra>
